<compile_context>
chip_gen: v7x
topology: tpu7x:2x2x1
jax: 0.10.0
libtpu: 0.0.40
codegen_flags: <defaults>
</compile_context>

<pallas_src>
import jax
import jax.numpy as jnp
from jax.experimental import pallas as pl
from jax.experimental.pallas import tpu as pltpu

BN_EPS = 1e-5


# --------------------------------------------------------------------------- #
# Shared BN + ReLU helper (traced inside the kernels)
# --------------------------------------------------------------------------- #
def _bn_relu(h, bn_ref, compute_dtype):
    """Training-mode BatchNorm1d + ReLU on an f32 (B, F) activation.

    Moments are computed in f32 with the two-pass (mean-centred) variance; the
    scale/shift/ReLU (and the cast feeding the next MXU matmul) run in
    `compute_dtype` (bf16 on the fast path, f32 for the exact path).
    """
    g = bn_ref[0:1, :]
    be = bn_ref[1:2, :]
    mu = jnp.mean(h, axis=0, keepdims=True)
    hc = h - mu                                       # centred (bias b cancels here)
    var = jnp.mean(hc * hc, axis=0, keepdims=True)    # biased var, no cancellation
    s = g * jax.lax.rsqrt(var + BN_EPS)
    hc = hc.astype(compute_dtype)
    return jnp.maximum(hc * s.astype(compute_dtype) + be.astype(compute_dtype), 0.0)


# --------------------------------------------------------------------------- #
# Gridless (single-block) kernel: whole batch resident in VMEM
# --------------------------------------------------------------------------- #
def _block_nn_kernel(x_ref, w1_ref, w2_ref, w3_ref, bn1_ref, bn2_ref, b3_ref, o_ref):
    mxu_dtype = w1_ref.dtype
    x = x_ref[...].astype(mxu_dtype)                  # cast in-kernel (no HBM pass)

    h = jnp.dot(x, w1_ref[...], preferred_element_type=jnp.float32)
    h = _bn_relu(h, bn1_ref, mxu_dtype)

    h = jnp.dot(h, w2_ref[...], preferred_element_type=jnp.float32)
    h = _bn_relu(h, bn2_ref, mxu_dtype)

    out = jnp.dot(h, w3_ref[...], preferred_element_type=jnp.float32)
    o_ref[...] = (out + b3_ref[...]).astype(o_ref.dtype)


# --------------------------------------------------------------------------- #
# Tiled-B kernel: stream x / layer-1 over a grid, finish layers 2-3 at last step
# --------------------------------------------------------------------------- #
def _block_nn_tiled_kernel(x_ref, w1_ref, w2_ref, w3_ref, bn1_ref, bn2_ref, b3_ref,
                           o_ref, h1_scr):
    i = pl.program_id(0)
    tb = x_ref.shape[0]
    mxu_dtype = w1_ref.dtype

    # ---- layer 1 on this batch tile (x DMA double-buffered by Pallas) ----
    x = x_ref[...].astype(mxu_dtype)
    row0 = pl.multiple_of(i * tb, tb)
    h1_scr[pl.ds(row0, tb), :] = jnp.dot(
        x, w1_ref[...], preferred_element_type=jnp.float32)

    # ---- last step: BN1 + layers 2-3 on the full batch, single store ----
    @pl.when(i == pl.num_programs(0) - 1)
    def _():
        h = _bn_relu(h1_scr[...], bn1_ref, mxu_dtype)
        h = jnp.dot(h, w2_ref[...], preferred_element_type=jnp.float32)
        h = _bn_relu(h, bn2_ref, mxu_dtype)
        out = jnp.dot(h, w3_ref[...], preferred_element_type=jnp.float32)
        o_ref[...] = (out + b3_ref[...]).astype(o_ref.dtype)
    # TODO(synk): on v7x, mark the batch axis parallel and reduce BN moments across
    # the two TensorCores via CMEM/VMEM_SHARED to use the second core.


# --------------------------------------------------------------------------- #
# Parameter preparation (pack / cast ONCE, not per call)
# --------------------------------------------------------------------------- #
def prepare_params(params, mxu_dtype=jnp.bfloat16):
    (w1, b1, g1, be1, w2, b2, g2, be2, w3, b3) = params
    # b1 / b2 intentionally discarded: a per-feature constant shift is removed
    # exactly by the training-mode BN mean subtraction that follows.
    # NOTE: NOT valid if this kernel is ever reused for eval-mode (running-stats) BN.
    w1p = w1.astype(mxu_dtype)
    w2p = w2.astype(mxu_dtype)
    w3p = w3.astype(mxu_dtype)
    bn1 = jnp.concatenate([g1, be1], axis=0).astype(jnp.float32)   # (2, hid)
    bn2 = jnp.concatenate([g2, be2], axis=0).astype(jnp.float32)   # (2, hid//2)
    b3p = b3.astype(jnp.float32)                                   # (1, dim_out)
    return (w1p, w2p, w3p, bn1, bn2, b3p)


# --------------------------------------------------------------------------- #
# VMEM budgeting (generation-aware)
# --------------------------------------------------------------------------- #
def _vmem_budget_bytes():
    cap = None
    try:
        cap = getattr(pltpu.get_tpu_info(), "vmem_capacity_bytes", None)
    except Exception:
        cap = None
    if not cap:
        cap = 64 * 1024 * 1024          # conservative fallback (v7x per-TC)
    return int(cap) * 3 // 4            # ~48 MiB on v7x, ~96 MiB on v5e/v6e


def _estimate_vmem_bytes(B, dim_in, hid, h2, dim_out, x_isz, w_isz, block_b=None):
    weights = (dim_in * hid + hid * h2 + h2 * dim_out) * w_isz
    smalls = (2 * hid + 2 * h2 + dim_out) * 4
    x_buf = (2 * block_b if block_b else B) * dim_in * x_isz   # 2x only when pipelined
    out_buf = B * dim_out * 4
    h1_scr = B * hid * 4 if block_b else 0
    # live activation temporaries: f32 h + centred copy + casted copy per hidden layer
    act = B * (dim_in * w_isz + hid * (8 + w_isz) + h2 * (8 + w_isz))
    return weights + smalls + x_buf + out_buf + h1_scr + act


# --------------------------------------------------------------------------- #
# Wrapper
# --------------------------------------------------------------------------- #
def block_nn_forward(x, packed_params, block_b=None):
    (w1p, w2p, w3p, bn1, bn2, b3p) = packed_params
    dim_in, hid = w1p.shape
    h2 = w2p.shape[1]
    dim_out = w3p.shape[1]
    B = x.shape[0]
    assert x.shape[1] == dim_in

    x_isz = jnp.dtype(x.dtype).itemsize
    w_isz = jnp.dtype(w1p.dtype).itemsize
    budget = _vmem_budget_bytes()

    use_tiled = (block_b is not None and block_b % 8 == 0
                 and B % block_b == 0 and B // block_b > 1)

    est = _estimate_vmem_bytes(B, dim_in, hid, h2, dim_out, x_isz, w_isz,
                               block_b if use_tiled else None)
    if est > budget:
        # TODO(synk): true streaming two-pass BN (accumulate sum/sum-sq per x tile,
        # re-stream / recompute h1) to remove the full-batch VMEM ceiling.
        raise NotImplementedError("batch too large for resident-batch Block_nn kernel")

    flops = 2 * B * (dim_in * hid + hid * h2 + h2 * dim_out) + 10 * B * (hid + h2)
    bytes_accessed = (B * dim_in * x_isz
                      + (w1p.size + w2p.size + w3p.size) * w_isz
                      + (bn1.size + bn2.size + b3p.size) * 4
                      + B * dim_out * 4)
    cost = pl.CostEstimate(flops=flops, transcendentals=hid + h2,
                           bytes_accessed=bytes_accessed)
    out_shape = jax.ShapeDtypeStruct((B, dim_out), jnp.float32)

    if not use_tiled:
        vmem = pl.BlockSpec(memory_space=pltpu.MemorySpace.VMEM)
        return pl.pallas_call(
            _block_nn_kernel,
            out_shape=out_shape,
            in_specs=[vmem] * 7,
            out_specs=vmem,
            compiler_params=pltpu.CompilerParams(vmem_limit_bytes=budget),
            cost_estimate=cost,
        )(x, w1p, w2p, w3p, bn1, bn2, b3p)

    # ---- tiled-B path: pipeline x / layer-1 over the batch ----
    const = lambda shape: pl.BlockSpec(shape, lambda i: (0, 0))
    grid_spec = pltpu.PrefetchScalarGridSpec(
        num_scalar_prefetch=0,
        grid=(B // block_b,),
        in_specs=[
            pl.BlockSpec((block_b, dim_in), lambda i: (i, 0)),
            const(w1p.shape), const(w2p.shape), const(w3p.shape),
            const(bn1.shape), const(bn2.shape), const(b3p.shape),
        ],
        out_specs=pl.BlockSpec((B, dim_out), lambda i: (0, 0)),
        scratch_shapes=[pltpu.VMEM((B, hid), jnp.float32)],
    )
    return pl.pallas_call(
        _block_nn_tiled_kernel,
        out_shape=out_shape,
        grid_spec=grid_spec,
        compiler_params=pltpu.CompilerParams(
            dimension_semantics=("arbitrary",),   # batch axis shares h1 scratch
            vmem_limit_bytes=budget),
        cost_estimate=cost,
    )(x, w1p, w2p, w3p, bn1, bn2, b3p)


# --------------------------------------------------------------------------- #
# Init + pure-JAX reference (PyTorch semantics)
# --------------------------------------------------------------------------- #
def init_params(key, dim_in, hid_dim, dim_out):
    def linear(k, fan_in, fan_out):
        kw, kb = jax.random.split(k)
        bound = 1.0 / jnp.sqrt(float(fan_in))
        w = jax.random.uniform(kw, (fan_in, fan_out), jnp.float32, -bound, bound)
        b = jax.random.uniform(kb, (1, fan_out), jnp.float32, -bound, bound)
        return w, b

    k1, k2, k3 = jax.random.split(key, 3)
    h2 = hid_dim // 2
    w1, b1 = linear(k1, dim_in, hid_dim)
    w2, b2 = linear(k2, hid_dim, h2)
    w3, b3 = linear(k3, h2, dim_out)
    g1, be1 = jnp.ones((1, hid_dim), jnp.float32), jnp.zeros((1, hid_dim), jnp.float32)
    g2, be2 = jnp.ones((1, h2), jnp.float32), jnp.zeros((1, h2), jnp.float32)
    return (w1, b1, g1, be1, w2, b2, g2, be2, w3, b3)


def block_nn_reference(x, params):
    (w1, b1, g1, be1, w2, b2, g2, be2, w3, b3) = params

    def bn(h, g, be):
        mu = jnp.mean(h, axis=0, keepdims=True)
        var = jnp.mean((h - mu) ** 2, axis=0, keepdims=True)
        return (h - mu) / jnp.sqrt(var + BN_EPS) * g + be

    h = x @ w1 + b1
    h = jnp.maximum(bn(h, g1, be1), 0.0)
    h = h @ w2 + b2
    h = jnp.maximum(bn(h, g2, be2), 0.0)
    return h @ w3 + b3


if __name__ == "__main__":
    # Small shapes consistent with Block_nn(dim_in, hid_dim, dim_out)
    B, dim_in, hid_dim, dim_out = 8, 32, 32, 8

    key = jax.random.PRNGKey(0)
    kx, kp, kx2 = jax.random.split(key, 3)
    x = jax.random.normal(kx, (B, dim_in), dtype=jnp.float32)
    params = init_params(kp, dim_in, hid_dim, dim_out)
    ref = block_nn_reference(x, params)

    # ---- f32 MXU operands, gridless: tight check ----
    packed_f32 = prepare_params(params, mxu_dtype=jnp.float32)
    out = jax.block_until_ready(block_nn_forward(x, packed_f32))
    assert out.shape == (B, dim_out)
    assert jnp.allclose(out, ref, atol=5e-4, rtol=5e-4), "f32 kernel mismatch"

    # ---- bf16 MXU operands (default fast path), f32 accumulation: loose check ----
    packed_bf16 = prepare_params(params)            # bf16 is now the default
    out_bf16 = jax.block_until_ready(block_nn_forward(x, packed_bf16))
    assert out_bf16.shape == (B, dim_out)
    assert bool(jnp.all(jnp.isfinite(out_bf16)))
    assert float(jnp.max(jnp.abs(out_bf16 - ref))) < 0.5, "bf16 kernel diverged"

    # ---- larger batch: tiled-B grid (pipelined x / layer-1), f32 + bf16 ----
    B2 = 256
    x2 = jax.random.normal(kx2, (B2, dim_in), dtype=jnp.float32)
    ref2 = block_nn_reference(x2, params)
    out2 = jax.block_until_ready(block_nn_forward(x2, packed_f32, block_b=64))
    assert out2.shape == (B2, dim_out)
    assert jnp.allclose(out2, ref2, atol=5e-4, rtol=5e-4), "tiled f32 kernel mismatch"
    out2_bf16 = jax.block_until_ready(block_nn_forward(x2, packed_bf16, block_b=64))
    assert float(jnp.max(jnp.abs(out2_bf16 - ref2))) < 0.5, "tiled bf16 kernel diverged"

    print("KERNEL_OK")
</pallas_src>

<mosaic_0001>
module attributes {stable_mosaic.version = 11 : i64} {
  func.func @_block_nn_kernel(%arg0: memref<8x32xf32, #tpu.memory_space<vmem>>, %arg1: memref<32x32xf32, #tpu.memory_space<vmem>>, %arg2: memref<32x16xf32, #tpu.memory_space<vmem>>, %arg3: memref<16x8xf32, #tpu.memory_space<vmem>>, %arg4: memref<2x32xf32, #tpu.memory_space<vmem>>, %arg5: memref<2x16xf32, #tpu.memory_space<vmem>>, %arg6: memref<1x8xf32, #tpu.memory_space<vmem>>, %arg7: memref<8x8xf32, #tpu.memory_space<vmem>>) attributes {dimension_semantics = [], scalar_prefetch = 0 : i64, scratch_operands = 0 : i64, tpu.core_type = #tpu.core_type<tc>} {
    %c0 = arith.constant 0 : index
    %c0_0 = arith.constant 0 : index
    %0 = vector.load %arg0[%c0, %c0_0] : memref<8x32xf32, #tpu.memory_space<vmem>>, vector<8x32xf32>
    %c0_1 = arith.constant 0 : index
    %c0_2 = arith.constant 0 : index
    %1 = vector.load %arg1[%c0_1, %c0_2] : memref<32x32xf32, #tpu.memory_space<vmem>>, vector<32x32xf32>
    %cst = arith.constant dense<0.000000e+00> : vector<8x32xf32>
    %2 = tpu.matmul %0, %1, %cst {dimension_numbers = #tpu.dot_dimension_numbers<[1], [0], [0], [1], [0, 0, 1, 1], [], []>} : vector<8x32xf32>, vector<32x32xf32>, vector<8x32xf32> -> vector<8x32xf32>
    %c0_3 = arith.constant 0 : index
    %c0_4 = arith.constant 0 : index
    %3 = vector.load %arg4[%c0_3, %c0_4] : memref<2x32xf32, #tpu.memory_space<vmem>>, vector<1x32xf32>
    %c1 = arith.constant 1 : index
    %c0_5 = arith.constant 0 : index
    %4 = vector.load %arg4[%c1, %c0_5] : memref<2x32xf32, #tpu.memory_space<vmem>>, vector<1x32xf32>
    %cst_6 = arith.constant dense<0.000000e+00> : vector<32xf32>
    %5 = vector.multi_reduction <add>, %2, %cst_6 [0] : vector<8x32xf32> to vector<32xf32>
    %6 = vector.shape_cast %5 : vector<32xf32> to vector<1x32xf32>
    %cst_7 = arith.constant 8.000000e+00 : f32
    %7 = vector.broadcast %cst_7 : f32 to vector<1x32xf32>
    %8 = arith.divf %6, %7 : vector<1x32xf32>
    %9 = vector.broadcast %8 : vector<1x32xf32> to vector<8x32xf32>
    %10 = arith.subf %2, %9 : vector<8x32xf32>
    %11 = arith.mulf %10, %10 : vector<8x32xf32>
    %cst_8 = arith.constant dense<0.000000e+00> : vector<32xf32>
    %12 = vector.multi_reduction <add>, %11, %cst_8 [0] : vector<8x32xf32> to vector<32xf32>
    %13 = vector.shape_cast %12 : vector<32xf32> to vector<1x32xf32>
    %cst_9 = arith.constant 8.000000e+00 : f32
    %14 = vector.broadcast %cst_9 : f32 to vector<1x32xf32>
    %15 = arith.divf %13, %14 : vector<1x32xf32>
    %cst_10 = arith.constant 9.99999974E-6 : f32
    %16 = vector.broadcast %cst_10 : f32 to vector<1x32xf32>
    %17 = arith.addf %15, %16 : vector<1x32xf32>
    %18 = math.rsqrt %17 : vector<1x32xf32>
    %19 = arith.mulf %3, %18 : vector<1x32xf32>
    %20 = vector.broadcast %19 : vector<1x32xf32> to vector<8x32xf32>
    %21 = arith.mulf %10, %20 : vector<8x32xf32>
    %22 = vector.broadcast %4 : vector<1x32xf32> to vector<8x32xf32>
    %23 = arith.addf %21, %22 : vector<8x32xf32>
    %cst_11 = arith.constant 0.000000e+00 : f32
    %24 = vector.broadcast %cst_11 : f32 to vector<8x32xf32>
    %25 = arith.maximumf %23, %24 : vector<8x32xf32>
    %c0_12 = arith.constant 0 : index
    %c0_13 = arith.constant 0 : index
    %26 = vector.load %arg2[%c0_12, %c0_13] : memref<32x16xf32, #tpu.memory_space<vmem>>, vector<32x16xf32>
    %cst_14 = arith.constant dense<0.000000e+00> : vector<8x16xf32>
    %27 = tpu.matmul %25, %26, %cst_14 {dimension_numbers = #tpu.dot_dimension_numbers<[1], [0], [0], [1], [0, 0, 1, 1], [], []>} : vector<8x32xf32>, vector<32x16xf32>, vector<8x16xf32> -> vector<8x16xf32>
    %c0_15 = arith.constant 0 : index
    %c0_16 = arith.constant 0 : index
    %28 = vector.load %arg5[%c0_15, %c0_16] : memref<2x16xf32, #tpu.memory_space<vmem>>, vector<1x16xf32>
    %c1_17 = arith.constant 1 : index
    %c0_18 = arith.constant 0 : index
    %29 = vector.load %arg5[%c1_17, %c0_18] : memref<2x16xf32, #tpu.memory_space<vmem>>, vector<1x16xf32>
    %cst_19 = arith.constant dense<0.000000e+00> : vector<16xf32>
    %30 = vector.multi_reduction <add>, %27, %cst_19 [0] : vector<8x16xf32> to vector<16xf32>
    %31 = vector.shape_cast %30 : vector<16xf32> to vector<1x16xf32>
    %cst_20 = arith.constant 8.000000e+00 : f32
    %32 = vector.broadcast %cst_20 : f32 to vector<1x16xf32>
    %33 = arith.divf %31, %32 : vector<1x16xf32>
    %34 = vector.broadcast %33 : vector<1x16xf32> to vector<8x16xf32>
    %35 = arith.subf %27, %34 : vector<8x16xf32>
    %36 = arith.mulf %35, %35 : vector<8x16xf32>
    %cst_21 = arith.constant dense<0.000000e+00> : vector<16xf32>
    %37 = vector.multi_reduction <add>, %36, %cst_21 [0] : vector<8x16xf32> to vector<16xf32>
    %38 = vector.shape_cast %37 : vector<16xf32> to vector<1x16xf32>
    %cst_22 = arith.constant 8.000000e+00 : f32
    %39 = vector.broadcast %cst_22 : f32 to vector<1x16xf32>
    %40 = arith.divf %38, %39 : vector<1x16xf32>
    %cst_23 = arith.constant 9.99999974E-6 : f32
    %41 = vector.broadcast %cst_23 : f32 to vector<1x16xf32>
    %42 = arith.addf %40, %41 : vector<1x16xf32>
    %43 = math.rsqrt %42 : vector<1x16xf32>
    %44 = arith.mulf %28, %43 : vector<1x16xf32>
    %45 = vector.broadcast %44 : vector<1x16xf32> to vector<8x16xf32>
    %46 = arith.mulf %35, %45 : vector<8x16xf32>
    %47 = vector.broadcast %29 : vector<1x16xf32> to vector<8x16xf32>
    %48 = arith.addf %46, %47 : vector<8x16xf32>
    %cst_24 = arith.constant 0.000000e+00 : f32
    %49 = vector.broadcast %cst_24 : f32 to vector<8x16xf32>
    %50 = arith.maximumf %48, %49 : vector<8x16xf32>
    %c0_25 = arith.constant 0 : index
    %c0_26 = arith.constant 0 : index
    %51 = vector.load %arg3[%c0_25, %c0_26] : memref<16x8xf32, #tpu.memory_space<vmem>>, vector<16x8xf32>
    %cst_27 = arith.constant dense<0.000000e+00> : vector<8x8xf32>
    %52 = tpu.matmul %50, %51, %cst_27 {dimension_numbers = #tpu.dot_dimension_numbers<[1], [0], [0], [1], [0, 0, 1, 1], [], []>} : vector<8x16xf32>, vector<16x8xf32>, vector<8x8xf32> -> vector<8x8xf32>
    %c0_28 = arith.constant 0 : index
    %c0_29 = arith.constant 0 : index
    %53 = vector.load %arg6[%c0_28, %c0_29] : memref<1x8xf32, #tpu.memory_space<vmem>>, vector<1x8xf32>
    %54 = vector.broadcast %53 : vector<1x8xf32> to vector<8x8xf32>
    %55 = arith.addf %52, %54 : vector<8x8xf32>
    %c0_30 = arith.constant 0 : index
    %c0_31 = arith.constant 0 : index
    %56 = vector.load %arg7[%c0_30, %c0_31] : memref<8x8xf32, #tpu.memory_space<vmem>>, vector<8x8xf32>
    tpu.vector_store %arg7[%c0_30, %c0_31], %55 {strides = array<i32>} : memref<8x8xf32, #tpu.memory_space<vmem>>, vector<8x8xf32>,
    return
  }
}

</mosaic_0001>

<bundles_post_ra>
// kernel: tpu_custom_call.1
= control target key start
LH: loop header
LB: loop body
LE: loop exit
PB: predicated region body
PF: predicated region fallthrough
CT: control target
= control target key end

     0   :  { %v446_v3 = vmov 0.0|0.0   ;;  %vm447_vm0 = vmmov 0   ;;  %v448_v6 = vmov 0.0   ;;  %s557_s0 = inlined_call_operand.vmem [shape: f32[8,32], index: 0, kind: input, shape index: {}]   ;;  %s558_s1 = inlined_call_operand.vmem [shape: f32[32,32], index: 1, kind: input, shape index: {}]   ;;  %s559_s2 = inlined_call_operand.vmem [shape: f32[32,16], index: 2, kind: input, shape index: {}]   ;;  %s560_s3 = inlined_call_operand.vmem [shape: f32[16,8], index: 3, kind: input, shape index: {}]   ;;  %s561_s4 = inlined_call_operand.vmem [shape: f32[2,32], index: 4, kind: input, shape index: {}]   ;;  %s562_s5 = inlined_call_operand.vmem [shape: f32[2,16], index: 5, kind: input, shape index: {}]   ;;  %s563_s6 = inlined_call_operand.vmem [shape: f32[1,8], index: 6, kind: input, shape index: {}]   ;;  %s564_s7 = inlined_call_operand.hbm [shape: f32[8,8], index: 7, kind: output, shape index: {}]  }
   0x1   :  { %v28_v0 = vld [vmem:[%s558_s1] sm:$0xff]  ;;  %v29_v1 = vld [vmem:[%s558_s1 + $0x8] sm:$0xff]  ;;  %v30_v2 = vld [vmem:[%s558_s1 + $0x10] sm:$0xff]  ;;  %399 = vmatprep.subr.bf16.mxu0 %v446_v3  ;;  %378 = vmatprep.mubr.msk.f32.mxu0 %vm447_vm0, %v448_v6 }
   0x2   :  { %v400_v4 = vpack.c.bf16 %v29_v1, %v28_v0  ;;  %v31_v5 = vld [vmem:[%s558_s1 + $0x18] sm:$0xff] }
   0x3   :  { %12 = vsyncpa [#allocation3], 0  ;;  %405 = vmatprep.subr.bf16.mxu1 %v446_v3  ;;  %389 = vmatprep.mubr.msk.f32.mxu1 %vm447_vm0, %v448_v6  ;;  %v403_v7 = vpack.c.bf16 %v31_v5, %v30_v2  ;;  %v27_v8 = vld [vmem:[%s557_s0] sm:$0xff]  ;;  %vm32_vm1 = vcmask 261120   ;;  %v142_v10 = vld [vmem:[%s559_s2 + $0x8] sm:$0xff]  ;;  %v130_v36 = vlaneseq  ;;  %vm220_vm2 = vcmask 130048  }
   0x4   :  { %401 = vmatpush3.bf16.msra.mxu0 %v400_v4  ;;  %v141_v9 = vld [vmem:[%s559_s2] sm:$0xff]  ;;  %v143_v12 = vld [vmem:[%s559_s2 + $0x10] sm:$0xff]  ;;  %v144_v13 = vld [vmem:[%s559_s2 + $0x18] sm:$0xff]  ;;  %s449_s28 = smov [#allocation2]   ;;  %vm335_vm3 = vcmask 64512  }
   0x5   :  { %402 = vmatprep.subr.bf16.mxu0 %v446_v3  ;;  %v406_v11 = vpack.c.bf16 %v142_v10, %v141_v9  ;;  %v409_v14 = vpack.c.bf16 %v144_v13, %v143_v12  ;;  %v131_v37 = vshrl.u32 %v130_v36, 7  ;;  %v106_v38 = vld [vmem:[%s561_s4] sm:$0x1]  ;;  %v352_v43 = vld [vmem:[%s561_s4 + $0x1] ss:$0 sm:$0xff]  ;;  %v254_v48 = vld [vmem:[%s560_s3 + $0x8] sm:$0xff] }
   0x6   :  { %v253_v47 = vld [vmem:[%s560_s3] sm:$0xff]  ;;  %s343_s29 = sshll.u32 %s449_s28, 4  ;;  %s344_s29 = int_to_ptr.vmem [resolvable:$true] %s343_s29 }
   0x7   :  { %407 = vmatpush3.bf16.msra.mxu1 %v406_v11  ;;  %v132_v39 = vsub.s32 0, %v131_v37  ;;  %v412_v49 = vpack.c.bf16 %v254_v48, %v253_v47  ;;  %v354_v11 = vld [vmem:[%s562_s5 + $0x1] ss:$0 sm:$0xff]  ;;  %s422_s30 = scalar_lea.vmem %s344_s29, 128  ;;  %p427_p1 = scmp.lt.s32.totalorder %s344_s29, %s344_s29 }
   0x8   :  { %404 = vmatpush3.bf16.msra.mxu0 %v403_v7  ;;  %408 = vmatprep.subr.bf16.mxu1 %v446_v3  ;;  %v218_v7 = vld [vmem:[%s562_s5] sm:$0x1]  ;;  %p423_p0 = scmp.ne.s32.totalorder %s344_s29, %s422_s30  ;;  %p428_p2 = scmp.lt.s32.totalorder %s422_s30, %s422_s30 }
   0x9   :  { %411 = vmatprep.subr.bf16.mxu0 %v446_v3 }
   0xa   :  { %p429_p3 = por %p428_p2, %p427_p1 }
   0xb   :  { %379 = vmatmul.mubr.msk.f32.vlgmr.msra.gmra.mrb[0].mxu0 %vm32_vm1, %v27_v8  ;;  %410 = vmatpush3.bf16.msra.mxu1 %v409_v14 }
   0xc   :  { %396 = vmatprep.mubr.msk.f32.mxu0 %vm447_vm0, %v448_v6  ;;  %413 = vmatpush3.bf16.msra.mxu0 %v412_v49  ;;  %p430_p4 = pnand %p429_p3, %p423_p0 }
  0xde   :  { %v102_v15 = vpop.f32.mrb[0].mxu0 }
  0xdf   :  { %v108_v16 = vsel %vm32_vm1, %v102_v15, 0.0  ;;  %v380_v17 = vpop.f32.mrb[1].mxu0 }
  0xe0   :  { %v109_v18 = vrot.slane %v108_v16, 4 }
  0xe2   :  { %v110_v19 = vadd.f32 %v109_v18, %v108_v16 }
  0xe4   :  { %v111_v20 = vrot.slane %v110_v19, 2 }
  0xe6   :  { %v112_v21 = vadd.f32 %v111_v20, %v110_v19 }
  0xe8   :  { %v113_v22 = vrot.slane %v112_v21, 1 }
  0xea   :  { %v114_v23 = vadd.f32 %v113_v22, %v112_v21 }
  0xec   :  { %v116_v24 = vmul.f32 0.125, %v114_v23 }
  0xee   :  { %v117_v25 = vsub.f32 %v102_v15, %v116_v24  ;;  %v355_v15 = vld [vmem:[%s563_s6] ss:$0 sm:$0xff] }
  0xf0   :  { %v118_v26 = vmul.f32 %v117_v25, %v117_v25 }
  0xf2   :  { %v119_v27 = vsel %vm32_vm1, %v118_v26, 0.0 }
  0xf3   :  { %v120_v28 = vrot.slane %v119_v27, 4 }
  0xf5   :  { %v121_v29 = vadd.f32 %v120_v28, %v119_v27 }
  0xf7   :  { %v122_v30 = vrot.slane %v121_v29, 2 }
  0xf9   :  { %v123_v31 = vadd.f32 %v122_v30, %v121_v29 }
  0xfb   :  { %v124_v32 = vrot.slane %v123_v31, 1 }
  0xfd   :  { %v125_v33 = vadd.f32 %v124_v32, %v123_v31 }
  0xff   :  { %v126_v34 = vmul.f32 0.125, %v125_v33 }
 0x101   :  { %v127_v35 = vadd.f32 1e-05, %v126_v34 }
 0x103   :  { %418 = vrsqrt.f32 %v127_v35 }
 0x10d   :  { %v419_v40 = vpop.eup %418 }
 0x10e   :  { %v129_v41 = vmul.f32 %v419_v40, %v106_v38 }
 0x110   :  { %v133_v42 = vrot.slane %v129_v41, %v132_v39 }
 0x112   :  { %v134_v44 = vmul.f32 %v133_v42, %v117_v25 }
 0x114   :  { %v139_v45 = vadd.f32 %v352_v43, %v134_v44 }
 0x116   :  { %v140_v46 = vmax.f32 %v139_v45, 0.0 }
 0x118   :  { %390 = vmatmul.mubr.msk.f32.vlgmr.msra.gmra.mrb[0].mxu1 %vm32_vm1, %v140_v46 }
 0x1eb   :  { %v214_v50 = vpop.f32.mrb[0].mxu1 }
 0x1ec   :  { %v221_v51 = vsel %vm220_vm2, %v214_v50, 0.0  ;;  %v391_v52 = vpop.f32.mrb[1].mxu1 }
 0x1ed   :  { %v222_v53 = vrot.slane %v221_v51, 4 }
 0x1ef   :  { %v223_v54 = vadd.f32 %v222_v53, %v221_v51 }
 0x1f1   :  { %v224_v55 = vrot.slane %v223_v54, 2 }
 0x1f3   :  { %v225_v56 = vadd.f32 %v224_v55, %v223_v54 }
 0x1f5   :  { %v226_v57 = vrot.slane %v225_v56, 1 }
 0x1f7   :  { %v227_v58 = vadd.f32 %v226_v57, %v225_v56 }
 0x1f9   :  { %v228_v59 = vmul.f32 0.125, %v227_v58 }
 0x1fb   :  { %v229_v60 = vsub.f32 %v214_v50, %v228_v59 }
 0x1fd   :  { %v230_v61 = vmul.f32 %v229_v60, %v229_v60 }
 0x1ff   :  { %v231_v62 = vsel %vm220_vm2, %v230_v61, 0.0 }
 0x200   :  { %v232_v63 = vrot.slane %v231_v62, 4 }
 0x202   :  { %v233_v0 = vadd.f32 %v232_v63, %v231_v62 }
 0x204   :  { %v234_v1 = vrot.slane %v233_v0, 2 }
 0x206   :  { %v235_v2 = vadd.f32 %v234_v1, %v233_v0 }
 0x208   :  { %v236_v3 = vrot.slane %v235_v2, 1 }
 0x20a   :  { %v237_v4 = vadd.f32 %v236_v3, %v235_v2 }
 0x20c   :  { %v238_v5 = vmul.f32 0.125, %v237_v4 }
 0x20e   :  { %v239_v6 = vadd.f32 1e-05, %v238_v5 }
 0x210   :  { %420 = vrsqrt.f32 %v239_v6 }
 0x21a   :  { %v421_v8 = vpop.eup %420 }
 0x21b   :  { %v241_v9 = vmul.f32 %v421_v8, %v218_v7 }
 0x21d   :  { %v245_v10 = vrot.slane %v241_v9, %v132_v39 }
 0x21f   :  { %v246_v12 = vmul.f32 %v245_v10, %v229_v60 }
 0x221   :  { %v251_v13 = vadd.f32 %v354_v11, %v246_v12 }
 0x223   :  { %v252_v14 = vmax.f32 %v251_v13, 0.0 }
 0x225   :  { %397 = vmatmul.mubr.msk.f32.vlgmr.msra.gmra.mrb[2].mxu0 %vm220_vm2, %v252_v14 }
 0x2f8   :  { %v331_v16 = vpop.f32.mrb[2].mxu0 }
 0x2f9   :  { %v332_v17 = vadd.f32 %v355_v15, %v331_v16  ;;  %v398_v18 = vpop.f32.mrb[3].mxu0 }
 0x2fb   :  { %336 = vst.msk [vmem:[#allocation2] sm:$0xff] %vm335_vm3, %v332_v17 }
 0x2fc   :  { %433 = shalt.err (!%p430_p4)
}
 0x2fd   :  { %s434_s9 = scalar_lea.hbm %s564_s7, 128 }
 0x2fe   :  { %p435_p5 = scmp.ne.s32.totalorder %s564_s7, %s434_s9  ;;  %p438_p6 = scmp.lt.u32.totalorder %s434_s9, %s564_s7 }
 0x300   :  { %p440_p7 = pnand %p438_p6, %p435_p5 }
 0x302   :  { %443 = shalt.err (!%p440_p7)
}
 0x303   :  { %346 = dma.vmem_to_hbm [thread:$0]  %s344_s29, 128, %s564_s7, [#allocation3]  }
 0x304   :  { %444 = dma.done.wait [#allocation3], 128  }
 0x305   :  { %445 = vsyncadd [#allocation3], 4294967168 }
 0x306   :  { %350 = vsyncpa [#allocation3], 1 }

</bundles_post_ra>
